<compile_context>
chip_gen: v6e
topology: v6e:2x2x1
jax: 0.10.0
libtpu: 0.0.40
codegen_flags: <defaults>
</compile_context>

<pallas_src>
import functools

import jax
import jax.numpy as jnp
from jax import lax
from jax.experimental import pallas as pl
from jax.experimental.pallas import tpu as pltpu

EPS = 1e-5


@functools.lru_cache(maxsize=None)
def _roll_sign():
    """Probe pltpu.roll's shift convention once (+1 == jnp.roll semantics)."""

    def probe(x_ref, o_ref):
        o_ref[...] = pltpu.roll(x_ref[...], 1, 1)

    x = jnp.tile(jnp.arange(128, dtype=jnp.float32), (8, 1))
    y = pl.pallas_call(
        probe, out_shape=jax.ShapeDtypeStruct((8, 128), jnp.float32))(x)
    # jnp.roll convention: out[i] = x[i - shift]  =>  out[:, 1] == x[:, 0] == 0.
    return 1 if float(y[0, 1]) == 0.0 else -1


def _make_basic_block_kernel(N, H, W, Cin, Cpad, P, has_proj, roll_sign):
    HW = H * W
    L = N * HW

    def regroup(a, c):
        # (N*c, HW) -> (c, N*HW): fold the batch onto the lane axis.  Lane
        # concat offsets are multiples of HW (128-aligned) and sublane slices
        # are multiples of 8 (c padded), so no relayouts.
        if N == 1:
            return a
        return jnp.concatenate(
            [a[i * c:(i + 1) * c, :] for i in range(N)], axis=1)

    def conv3x3_cols(a, yy, xx):
        # a: (C, L) f32, channels on sublanes, N*H*W on lanes.  Returns the
        # im2col matrix (9*C, L) bf16 (tap-major, channel-minor) built with
        # XLU lane rotations + halo masks -- no padded scratch, no ref slices.
        taps = []
        for dy in range(3):
            for dx in range(3):
                s = (roll_sign * ((1 - dy) * W + (1 - dx))) % L
                v = a if s == 0 else pltpu.roll(a, s, 1)
                conds = []
                if dy == 0:
                    conds.append(yy >= 1)
                elif dy == 2:
                    conds.append(yy <= H - 2)
                if dx == 0:
                    conds.append(xx >= 1)
                elif dx == 2:
                    conds.append(xx <= W - 2)
                if conds:
                    m = conds[0]
                    for extra in conds[1:]:
                        m = jnp.logical_and(m, extra)
                    v = jnp.where(m, v, 0.0)
                taps.append(v)
        # All pieces are 8-sublane-aligned f32; one cast at the MXU boundary.
        return jnp.concatenate(taps, axis=0).astype(jnp.bfloat16)

    def bn_train(z, g, b):
        # Training-mode BatchNorm2d: per-channel (sublane-row) stats over all
        # N*H*W lanes, biased variance, centred form.  f32 throughout.
        mean = jnp.mean(z, axis=1, keepdims=True)
        zc = z - mean
        var = jnp.mean(zc * zc, axis=1, keepdims=True)
        return zc * lax.rsqrt(var + EPS) * g + b

    def kernel(x_ref, coords_ref, w1_ref, w2_ref, bn_ref, out_ref):
        xg = regroup(x_ref[...], Cpad)                     # (Cpad, L) f32

        coords = coords_ref[...]                           # (2, L) int32
        yy = coords[0:1, :]
        xx = coords[1:2, :]

        bn = bn_ref[...]                                   # (P, 6) f32
        g1, b1 = bn[:, 0:1], bn[:, 1:2]
        g2, b2 = bn[:, 2:3], bn[:, 3:4]

        # conv1 (3x3) and the 1x1 projection shortcut fused in ONE MXU matmul.
        cols1 = conv3x3_cols(xg, yy, xx)                   # (9*Cpad, L) bf16
        z1 = jnp.dot(w1_ref[...], cols1,
                     preferred_element_type=jnp.float32)   # (P | 2P, L) f32
        out1 = jnp.maximum(bn_train(z1[0:P, :], g1, b1), 0.0)
        if has_proj:
            gs, bs = bn[:, 4:5], bn[:, 5:6]
            sc = bn_train(z1[P:2 * P, :], gs, bs)
        else:
            sc = xg[0:P, :]                                # identity, f32

        # conv2 (3x3) -> bn2
        cols2 = conv3x3_cols(out1, yy, xx)                 # (9*P, L) bf16
        z2 = jnp.dot(w2_ref[...], cols2,
                     preferred_element_type=jnp.float32)   # (P, L) f32
        out2 = bn_train(z2, g2, b2)

        res = jnp.maximum(out2 + sc, 0.0)                  # (P, L) f32

        # NCHW-native (N*P, HW) output slab: lane-dense unmasked stores; the
        # re-split slices lanes at HW multiples (vreg-aligned).
        if N == 1:
            out_ref[...] = res.astype(out_ref.dtype)
        else:
            out_ref[...] = jnp.concatenate(
                [res[:, i * HW:(i + 1) * HW] for i in range(N)],
                axis=0).astype(out_ref.dtype)

    return kernel


def basic_block_forward(x_nchw, params, stride=1):
    """Forward pass of BasicBlock.  Input/output in NCHW (PyTorch convention)."""
    if stride != 1:
        # TODO(synk): strided 3x3 / 1x1 convs (stride > 1) not implemented.
        raise NotImplementedError("stride > 1 not supported by this kernel")

    N, Cin, H, W = x_nchw.shape
    P = params["w1"].shape[-1]
    has_proj = Cin != P
    assert P % 8 == 0, "planes must be a multiple of 8 (sublane tile)"
    HW = H * W
    Cpad = ((Cin + 7) // 8) * 8

    # NCHW-native input slab (free reshape); input channels zero-padded to a
    # multiple of 8 sublanes so every in-kernel slice/concat stays aligned.
    # TODO(synk): at memory-bound production sizes feed x as bf16 when
    #   has_proj (both consumers are bf16 matmuls) to halve the input DMA.
    x = x_nchw.astype(jnp.float32)
    if Cpad != Cin:
        x = jnp.concatenate(
            [x, jnp.zeros((N, Cpad - Cin, H, W), jnp.float32)], axis=1)
    x2d = x.reshape(N * Cpad, HW)

    # Halo-mask coordinate table: per lane position, (y, x) inside the image.
    idx = jnp.arange(HW, dtype=jnp.int32)
    coords = jnp.stack([jnp.tile(idx // W, N), jnp.tile(idx % W, N)], axis=0)

    # Weights as (out-channel rows, 9*Cpad columns) bf16, tap-major /
    # channel-minor to match the kernel's im2col row order.  The projection
    # 1x1 conv is fused as P extra rows hitting only the centre-tap columns.
    w1p = jnp.zeros((3, 3, Cpad, P), jnp.float32)
    w1p = w1p.at[:, :, :Cin, :].set(params["w1"].astype(jnp.float32))
    w1t = jnp.transpose(w1p, (3, 0, 1, 2)).reshape(P, 9 * Cpad)
    if has_proj:
        wst = jnp.transpose(params["ws"].reshape(Cin, P)).astype(jnp.float32)
        wsf = jnp.zeros((P, 9 * Cpad), jnp.float32)
        wsf = wsf.at[:, 4 * Cpad:4 * Cpad + Cin].set(wst)   # centre tap only
        w1e = jnp.concatenate([w1t, wsf], axis=0)            # (2P, 9*Cpad)
    else:
        w1e = w1t                                             # (P, 9*Cpad)
    w1e = w1e.astype(jnp.bfloat16)
    w2t = jnp.transpose(params["w2"], (3, 0, 1, 2)).reshape(P, 9 * P)
    w2t = w2t.astype(jnp.bfloat16)

    # All per-channel BN params in one (P, 6) f32 array (channels on sublanes).
    def col(v):
        return v.reshape(P, 1).astype(jnp.float32)
    bn_cols = [col(params["g1"]), col(params["b1"]),
               col(params["g2"]), col(params["b2"])]
    if has_proj:
        bn_cols += [col(params["gs"]), col(params["bs"])]
    else:
        bn_cols += [jnp.ones((P, 1), jnp.float32),
                    jnp.zeros((P, 1), jnp.float32)]
    bn_pack = jnp.concatenate(bn_cols, axis=1)                # (P, 6)

    inputs = [x2d, coords, w1e, w2t, bn_pack]

    def full_spec(a):
        return pl.BlockSpec(a.shape, lambda i, _n=a.ndim: (0,) * _n)

    kernel = _make_basic_block_kernel(N, H, W, Cin, Cpad, P, has_proj,
                                      _roll_sign())

    # TODO(synk): production ResNet shapes need a tiled "parallel" grid (row
    #   blocks of N*H*W + two-pass BN stats) for megacore/v7x and MXU-sized
    #   tiles; at this toy CIFAR block size one grid point is the whole tile.
    out2d = pl.pallas_call(
        kernel,
        out_shape=jax.ShapeDtypeStruct((N * P, HW), jnp.float32),
        grid=(1,),
        in_specs=[full_spec(a) for a in inputs],
        out_specs=pl.BlockSpec((N * P, HW), lambda i: (0, 0)),
        compiler_params=pltpu.CompilerParams(
            dimension_semantics=("arbitrary",)),
    )(*inputs)

    return out2d.reshape(N, P, H, W)                          # NCHW, no transpose


def basic_block_reference(x_nchw, params):
    """Plain-JAX reference with the same precision policy (bf16-in / f32-acc)."""
    x = jnp.transpose(x_nchw, (0, 2, 3, 1)).astype(jnp.float32)

    def conv(a, w):
        return lax.conv_general_dilated(
            a.astype(jnp.bfloat16), w.astype(jnp.bfloat16),
            window_strides=(1, 1), padding="SAME",
            dimension_numbers=("NHWC", "HWIO", "NHWC"),
            preferred_element_type=jnp.float32)

    def bn(a, g, b):
        mean = jnp.mean(a, axis=(0, 1, 2), keepdims=True)
        ac = a - mean
        var = jnp.mean(ac * ac, axis=(0, 1, 2), keepdims=True)
        return ac * lax.rsqrt(var + EPS) * g + b

    out = jax.nn.relu(bn(conv(x, params["w1"]), params["g1"], params["b1"]))
    out = bn(conv(out, params["w2"]), params["g2"], params["b2"])
    if "ws" in params:
        sc = bn(conv(x, params["ws"]), params["gs"], params["bs"])
    else:
        sc = x
    out = jax.nn.relu(out + sc)
    return jnp.transpose(out, (0, 3, 1, 2))


if __name__ == "__main__":
    key = jax.random.PRNGKey(0)
    ks = jax.random.split(key, 16)

    # --- Case 1: BasicBlock(in_planes=4, planes=8) -> projection shortcut ---
    N, Cin, H, W = 2, 4, 16, 16
    planes = 8
    x = jax.random.normal(ks[0], (N, Cin, H, W), jnp.float32)
    params = {
        "w1": 0.2 * jax.random.normal(ks[1], (3, 3, Cin, planes), jnp.float32),
        "g1": 1.0 + 0.1 * jax.random.normal(ks[2], (planes,), jnp.float32),
        "b1": 0.1 * jax.random.normal(ks[3], (planes,), jnp.float32),
        "w2": 0.2 * jax.random.normal(ks[4], (3, 3, planes, planes), jnp.float32),
        "g2": 1.0 + 0.1 * jax.random.normal(ks[5], (planes,), jnp.float32),
        "b2": 0.1 * jax.random.normal(ks[6], (planes,), jnp.float32),
        "ws": 0.2 * jax.random.normal(ks[7], (1, 1, Cin, planes), jnp.float32),
        "gs": 1.0 + 0.1 * jax.random.normal(ks[8], (planes,), jnp.float32),
        "bs": 0.1 * jax.random.normal(ks[9], (planes,), jnp.float32),
    }
    out = jax.block_until_ready(basic_block_forward(x, params, stride=1))
    ref = jax.block_until_ready(basic_block_reference(x, params))
    assert out.shape == (N, planes, H, W), out.shape
    err = float(jnp.max(jnp.abs(out - ref)))
    assert jnp.allclose(out, ref, atol=2e-3, rtol=2e-3), err

    # --- Case 2: BasicBlock(in_planes=8, planes=8) -> identity shortcut ---
    Cin2 = planes
    x2 = jax.random.normal(ks[10], (N, Cin2, H, W), jnp.float32)
    params2 = {
        "w1": 0.2 * jax.random.normal(ks[11], (3, 3, Cin2, planes), jnp.float32),
        "g1": 1.0 + 0.1 * jax.random.normal(ks[12], (planes,), jnp.float32),
        "b1": 0.1 * jax.random.normal(ks[13], (planes,), jnp.float32),
        "w2": 0.2 * jax.random.normal(ks[14], (3, 3, planes, planes), jnp.float32),
        "g2": 1.0 + 0.1 * jax.random.normal(ks[15], (planes,), jnp.float32),
        "b2": jnp.zeros((planes,), jnp.float32),
    }
    out2 = jax.block_until_ready(basic_block_forward(x2, params2, stride=1))
    ref2 = jax.block_until_ready(basic_block_reference(x2, params2))
    assert out2.shape == (N, planes, H, W), out2.shape
    err2 = float(jnp.max(jnp.abs(out2 - ref2)))
    assert jnp.allclose(out2, ref2, atol=2e-3, rtol=2e-3), err2

    print("KERNEL_OK")
</pallas_src>

<mosaic_0001>
module attributes {stable_mosaic.version = 11 : i64} {
  func.func @probe(%arg0: memref<8x128xf32, #tpu.memory_space<vmem>>, %arg1: memref<8x128xf32, #tpu.memory_space<vmem>>) attributes {dimension_semantics = [], scalar_prefetch = 0 : i64, scratch_operands = 0 : i64, tpu.core_type = #tpu.core_type<tc>} {
    %c0 = arith.constant 0 : index
    %c0_0 = arith.constant 0 : index
    %0 = vector.load %arg0[%c0, %c0_0] : memref<8x128xf32, #tpu.memory_space<vmem>>, vector<8x128xf32>
    %c1_i32 = arith.constant 1 : i32
    %1 = tpu.dynamic_rotate %0 by %c1_i32 dim 1 : vector<8x128xf32>, i32 -> vector<8x128xf32>
    %c0_1 = arith.constant 0 : index
    %c0_2 = arith.constant 0 : index
    %2 = vector.load %arg1[%c0_1, %c0_2] : memref<8x128xf32, #tpu.memory_space<vmem>>, vector<8x128xf32>
    tpu.vector_store %arg1[%c0_1, %c0_2], %1 {strides = array<i32>} : memref<8x128xf32, #tpu.memory_space<vmem>>, vector<8x128xf32>,
    return
  }
}

</mosaic_0001>

<bundles_post_ra>
// kernel: tpu_custom_call.1
= control target key start
LH: loop header
LB: loop body
LE: loop exit
PB: predicated region body
PF: predicated region fallthrough
CT: control target
= control target key end

     0   :  { %6 = vsyncpa [#allocation3], 0  ;;  %s106_s0 = inlined_call_operand.hbm [shape: f32[8,128], index: 0, kind: input, shape index: {}]   ;;  %s107_s1 = inlined_call_operand.hbm [shape: f32[8,128], index: 1, kind: output, shape index: {}]  }
   0x1   :  { %7 = vsyncpa [#allocation4], 0  ;;  %s87_s6 = smov [#allocation2]  }
   0x2   :  { %s14_s7 = sshll.u32 %s87_s6, 4  ;;  %s15_s7 = int_to_ptr.vmem [resolvable:$true] %s14_s7 }
   0x3   :  { %s51_s8 = scalar_lea.vmem %s15_s7, 128  ;;  %p56_p1 = scmp.lt.s32.totalorder %s15_s7, %s15_s7 }
   0x4   :  { %p52_p0 = scmp.ne.s32.totalorder %s15_s7, %s51_s8  ;;  %p57_p2 = scmp.lt.s32.totalorder %s51_s8, %s51_s8 }
   0x6   :  { %p58_p3 = por %p57_p2, %p56_p1 }
   0x8   :  { %p59_p4 = pnand %p58_p3, %p52_p0 }
   0xa   :  { %62 = shalt.err (!%p59_p4)
}
   0xb   :  { %17 = dma.hbm_to_vmem [thread:$0]  %s106_s0, 128, %s15_s7, [#allocation3]  }
   0xc   :  { %83 = dma.done.wait [#allocation3], 128  }
   0xd   :  { %84 = vsyncadd [#allocation3], 4294967168  ;;  %v21_v0 = vld [vmem:[#allocation2] sm:$0xff]  ;;  %s88_s11 = smov 1   ;;  %s89_s12 = smov [#allocation5]  }
   0xe   :  { %22 = vrot.lane.b32.xlu0 %v21_v0, %s88_s11  ;;  %s31_s13 = sshll.u32 %s89_s12, 4  ;;  %s32_s13 = int_to_ptr.vmem [resolvable:$true] %s31_s13 }
   0xf   :  { %s63_s14 = scalar_lea.vmem %s32_s13, 128  ;;  %p68_p6 = scmp.lt.s32.totalorder %s32_s13, %s32_s13 }
  0x10   :  { %p64_p5 = scmp.ne.s32.totalorder %s32_s13, %s63_s14  ;;  %p69_p7 = scmp.lt.s32.totalorder %s63_s14, %s63_s14 }
  0x12   :  { %p70_p8 = por %p69_p7, %p68_p6 }
  0x14   :  { %p71_p9 = pnand %p70_p8, %p64_p5 }
  0x80   :  { %v23_v1 = vpop.permute.xlu0 %22 }
  0x81   :  { %24 = vst [vmem:[#allocation5] sm:$0xff] %v23_v1 }
  0x82   :  { %74 = shalt.err (!%p71_p9)
}
  0x83   :  { %34 = dma.vmem_to_hbm [thread:$0]  %s32_s13, 128, %s107_s1, [#allocation4]  }
  0x84   :  { %85 = dma.done.wait [#allocation4], 128  }
  0x85   :  { %86 = vsyncadd [#allocation4], 4294967168 }
  0x86   :  { %38 = vsyncpa [#allocation3], 1 }
  0x87   :  { %39 = vsyncpa [#allocation4], 1 }

</bundles_post_ra>
